<compile_context>
chip_gen: v6e
topology: v6e:2x2x1
jax: 0.10.0
libtpu: 0.0.40
codegen_flags: <defaults>
</compile_context>

<pallas_src>
import functools

import jax
import jax.numpy as jnp
from jax.experimental import pallas as pl
from jax.experimental.pallas import tpu as pltpu

_LANE = 128
_SUBLANE = 8
_NEG_BIG = -1e30  # "minus infinity" for padded class logits (finite -> no inf-inf NaN risk)


def _round_up(x, m):
    return ((x + m - 1) // m) * m


def _mlp_kernel(x1_ref, x2_ref, w1_ref, b1_ref, w2_ref, b2_ref, o_ref, *,
                input_dim, num_classes):
    # x1_ref, x2_ref: [TB, input_dim]
    # w1_ref: [2*input_dim, Hp]   b1_ref: [1, Hp]
    # w2_ref: [Hp, Cp]            b2_ref: [1, Cp]   (padded classes have -1e30 bias)
    # o_ref:  [TB, num_classes]   (narrow HBM output; compute stays 128-lane wide)

    # Fused concat: x @ W1 == x1 @ W1[:D] + x2 @ W1[D:]  (static sublane-aligned slices
    # since input_dim % 8 == 0; perf-only caveat otherwise).
    h = jnp.dot(x1_ref[...], w1_ref[:input_dim, :], preferred_element_type=jnp.float32)
    h = h + jnp.dot(x2_ref[...], w1_ref[input_dim:, :], preferred_element_type=jnp.float32)
    h = h + b1_ref[...]
    h = jnp.maximum(h, 0.0)  # ReLU (padded hidden units stay exactly 0)

    # Output layer: lane-dense [TB, 128] logits; padded classes -> -1e30 -> exp == 0.
    logits = jnp.dot(h, w2_ref[...], preferred_element_type=jnp.float32) + b2_ref[...]

    # Numerically stable softmax over the (padded) class axis.
    m = jnp.max(logits, axis=-1, keepdims=True)
    e = jnp.exp(logits - m)
    denom = jnp.sum(e, axis=-1, keepdims=True)
    inv = pl.reciprocal(denom, approx=False)  # EUP slot; exact to keep 1e-5 tolerance
    probs = e * inv

    # Store only the real classes (single masked-store pass; no padded writeback to HBM).
    o_ref[...] = probs[:, :num_classes].astype(o_ref.dtype)


def mlp_classifier_forward(x1, x2, w1, b1, w2, b2, *, batch_tile=2048):
    """Pallas forward pass equivalent to MLPClassifier.forward(x1, x2).

    x1, x2: [B, input_dim] float32
    w1: [2*input_dim, hidden] (transposed vs. PyTorch), b1: [1, hidden] or [hidden]
    w2: [hidden, 2],                                    b2: [1, 2] or [2]
    """
    batch, input_dim = x1.shape
    hidden = w1.shape[1]
    num_classes = w2.shape[1]

    # --- Pad hidden/class dims to the 128-lane grain (zero weights; -1e30 class bias) ---
    hidden_p = _round_up(hidden, _LANE)
    class_p = _round_up(num_classes, _LANE)
    w1_p = jnp.pad(w1, ((0, 0), (0, hidden_p - hidden)))
    b1_p = jnp.pad(jnp.reshape(b1, (1, hidden)), ((0, 0), (0, hidden_p - hidden)))
    w2_p = jnp.pad(w2, ((0, hidden_p - hidden), (0, class_p - num_classes)))
    b2_p = jnp.pad(jnp.reshape(b2, (1, num_classes)),
                   ((0, 0), (0, class_p - num_classes)),
                   constant_values=_NEG_BIG)

    # --- Batch tiling ---
    # >= 2 tiles whenever the batch allows it (v7x megacore), tile a multiple of 8,
    # ragged final block handled by Pallas (no host-side jnp.pad of the inputs).
    tb = min(batch_tile, _round_up(pl.cdiv(batch, 2), _SUBLANE))
    if tb >= batch:
        tb = batch  # single tile; block == full batch dim so the (8,128) rule still holds
    num_tiles = pl.cdiv(batch, tb)

    out = pl.pallas_call(
        functools.partial(_mlp_kernel, input_dim=input_dim, num_classes=num_classes),
        out_shape=jax.ShapeDtypeStruct((batch, num_classes), jnp.float32),
        grid=(num_tiles,),
        in_specs=[
            pl.BlockSpec((tb, input_dim), lambda i: (i, 0)),            # x1
            pl.BlockSpec((tb, input_dim), lambda i: (i, 0)),            # x2
            pl.BlockSpec((2 * input_dim, hidden_p), lambda i: (0, 0)),  # w1 (resident)
            pl.BlockSpec((1, hidden_p), lambda i: (0, 0)),              # b1 (resident)
            pl.BlockSpec((hidden_p, class_p), lambda i: (0, 0)),        # w2 (resident)
            pl.BlockSpec((1, class_p), lambda i: (0, 0)),               # b2 (resident)
        ],
        out_specs=pl.BlockSpec((tb, num_classes), lambda i: (i, 0)),
        compiler_params=pltpu.CompilerParams(
            dimension_semantics=("parallel",),
        ),
    )(x1, x2, w1_p, b1_p, w2_p, b2_p)

    return out


def init_params(key, input_dim, hidden_dim):
    """Deterministic init matching the PyTorch module's parameter shapes.

    PyTorch: Linear(input_dim*2, hidden_dim), Linear(hidden_dim, 2).
    Weights stored as [in, out] (transposed) for the x @ W convention.
    """
    k1, k2, k3, k4 = jax.random.split(key, 4)
    in1 = input_dim * 2
    bound1 = 1.0 / jnp.sqrt(in1)
    bound2 = 1.0 / jnp.sqrt(hidden_dim)
    w1 = jax.random.uniform(k1, (in1, hidden_dim), jnp.float32, -bound1, bound1)
    b1 = jax.random.uniform(k2, (1, hidden_dim), jnp.float32, -bound1, bound1)
    w2 = jax.random.uniform(k3, (hidden_dim, 2), jnp.float32, -bound2, bound2)
    b2 = jax.random.uniform(k4, (1, 2), jnp.float32, -bound2, bound2)
    return w1, b1, w2, b2


if __name__ == "__main__":
    key = jax.random.PRNGKey(0)
    kx1, kx2, kp = jax.random.split(key, 3)

    batch = 8
    input_dim = 16
    hidden_dim = 32

    x1 = jax.random.normal(kx1, (batch, input_dim), jnp.float32)
    x2 = jax.random.normal(kx2, (batch, input_dim), jnp.float32)
    w1, b1, w2, b2 = init_params(kp, input_dim, hidden_dim)

    out = mlp_classifier_forward(x1, x2, w1, b1, w2, b2)
    out = jax.block_until_ready(out)

    # Reference check in plain JAX (same math as the PyTorch module).
    x = jnp.concatenate((x1, x2), axis=1)
    h = jnp.maximum(x @ w1 + b1, 0.0)
    logits = h @ w2 + b2
    ref = jax.nn.softmax(logits, axis=1)

    assert out.shape == (batch, 2)
    assert jnp.allclose(out, ref, atol=1e-5, rtol=1e-5)
    assert jnp.allclose(jnp.sum(out, axis=1), 1.0, atol=1e-5)

    print("KERNEL_OK")
</pallas_src>

<mosaic_0001>
module attributes {stable_mosaic.version = 11 : i64} {
  func.func @_mlp_kernel(%arg0: i32, %arg1: memref<8x16xf32, #tpu.memory_space<vmem>>, %arg2: memref<8x16xf32, #tpu.memory_space<vmem>>, %arg3: memref<32x128xf32, #tpu.memory_space<vmem>>, %arg4: memref<1x128xf32, #tpu.memory_space<vmem>>, %arg5: memref<128x128xf32, #tpu.memory_space<vmem>>, %arg6: memref<1x128xf32, #tpu.memory_space<vmem>>, %arg7: memref<8x2xf32, #tpu.memory_space<vmem>>) attributes {dimension_semantics = [#tpu.dimension_semantics<parallel>], iteration_bounds = array<i64: 1>, scalar_prefetch = 0 : i64, scratch_operands = 0 : i64, tpu.core_type = #tpu.core_type<tc>, window_params = [{transform_indices = @transform_0, window_bounds = array<i64: 8, 16>}, {transform_indices = @transform_1, window_bounds = array<i64: 8, 16>}, {pipeline_mode = #tpu.pipeline_mode<synchronous>, transform_indices = @transform_2, window_bounds = array<i64: 32, 128>}, {pipeline_mode = #tpu.pipeline_mode<synchronous>, transform_indices = @transform_3, window_bounds = array<i64: 1, 128>}, {pipeline_mode = #tpu.pipeline_mode<synchronous>, transform_indices = @transform_4, window_bounds = array<i64: 128, 128>}, {pipeline_mode = #tpu.pipeline_mode<synchronous>, transform_indices = @transform_5, window_bounds = array<i64: 1, 128>}, {transform_indices = @transform_6, window_bounds = array<i64: 8, 2>}]} {
    %c0 = arith.constant 0 : index
    %c0_0 = arith.constant 0 : index
    %0 = vector.load %arg1[%c0, %c0_0] : memref<8x16xf32, #tpu.memory_space<vmem>>, vector<8x16xf32>
    %c0_1 = arith.constant 0 : index
    %c0_2 = arith.constant 0 : index
    %1 = vector.load %arg3[%c0_1, %c0_2] : memref<32x128xf32, #tpu.memory_space<vmem>>, vector<16x128xf32>
    %cst = arith.constant dense<0.000000e+00> : vector<8x128xf32>
    %2 = tpu.matmul %0, %1, %cst {dimension_numbers = #tpu.dot_dimension_numbers<[1], [0], [0], [1], [0, 0, 1, 1], [], []>} : vector<8x16xf32>, vector<16x128xf32>, vector<8x128xf32> -> vector<8x128xf32>
    %c0_3 = arith.constant 0 : index
    %c0_4 = arith.constant 0 : index
    %3 = vector.load %arg2[%c0_3, %c0_4] : memref<8x16xf32, #tpu.memory_space<vmem>>, vector<8x16xf32>
    %c16 = arith.constant 16 : index
    %c0_5 = arith.constant 0 : index
    %4 = vector.load %arg3[%c16, %c0_5] : memref<32x128xf32, #tpu.memory_space<vmem>>, vector<16x128xf32>
    %cst_6 = arith.constant dense<0.000000e+00> : vector<8x128xf32>
    %5 = tpu.matmul %3, %4, %cst_6 {dimension_numbers = #tpu.dot_dimension_numbers<[1], [0], [0], [1], [0, 0, 1, 1], [], []>} : vector<8x16xf32>, vector<16x128xf32>, vector<8x128xf32> -> vector<8x128xf32>
    %6 = arith.addf %2, %5 : vector<8x128xf32>
    %c0_7 = arith.constant 0 : index
    %c0_8 = arith.constant 0 : index
    %7 = vector.load %arg4[%c0_7, %c0_8] : memref<1x128xf32, #tpu.memory_space<vmem>>, vector<1x128xf32>
    %8 = vector.broadcast %7 : vector<1x128xf32> to vector<8x128xf32>
    %9 = arith.addf %6, %8 : vector<8x128xf32>
    %cst_9 = arith.constant 0.000000e+00 : f32
    %10 = vector.broadcast %cst_9 : f32 to vector<8x128xf32>
    %11 = arith.maximumf %9, %10 : vector<8x128xf32>
    %c0_10 = arith.constant 0 : index
    %c0_11 = arith.constant 0 : index
    %12 = vector.load %arg5[%c0_10, %c0_11] : memref<128x128xf32, #tpu.memory_space<vmem>>, vector<128x128xf32>
    %cst_12 = arith.constant dense<0.000000e+00> : vector<8x128xf32>
    %13 = tpu.matmul %11, %12, %cst_12 {dimension_numbers = #tpu.dot_dimension_numbers<[1], [0], [0], [1], [0, 0, 1, 1], [], []>} : vector<8x128xf32>, vector<128x128xf32>, vector<8x128xf32> -> vector<8x128xf32>
    %c0_13 = arith.constant 0 : index
    %c0_14 = arith.constant 0 : index
    %14 = vector.load %arg6[%c0_13, %c0_14] : memref<1x128xf32, #tpu.memory_space<vmem>>, vector<1x128xf32>
    %15 = vector.broadcast %14 : vector<1x128xf32> to vector<8x128xf32>
    %16 = arith.addf %13, %15 : vector<8x128xf32>
    %cst_15 = arith.constant dense<0xFF800000> : vector<8xf32>
    %17 = vector.multi_reduction <maximumf>, %16, %cst_15 [1] : vector<8x128xf32> to vector<8xf32>
    %18 = vector.shape_cast %17 : vector<8xf32> to vector<8x1xf32>
    %19 = vector.broadcast %18 : vector<8x1xf32> to vector<8x128xf32>
    %20 = arith.subf %16, %19 : vector<8x128xf32>
    %21 = math.exp %20 : vector<8x128xf32>
    %cst_16 = arith.constant dense<0.000000e+00> : vector<8xf32>
    %22 = vector.multi_reduction <add>, %21, %cst_16 [1] : vector<8x128xf32> to vector<8xf32>
    %23 = vector.shape_cast %22 : vector<8xf32> to vector<8x1xf32>
    %24 = tpu.reciprocal %23 : vector<8x1xf32> -> vector<8x1xf32>
    %25 = vector.broadcast %24 : vector<8x1xf32> to vector<8x128xf32>
    %26 = arith.mulf %21, %25 : vector<8x128xf32>
    %27 = vector.extract_strided_slice %26 {offsets = [0, 0], sizes = [8, 2], strides = [1, 1]} : vector<8x128xf32> to vector<8x2xf32>
    %c0_17 = arith.constant 0 : index
    %c0_18 = arith.constant 0 : index
    %28 = vector.load %arg7[%c0_17, %c0_18] : memref<8x2xf32, #tpu.memory_space<vmem>>, vector<8x2xf32>
    tpu.vector_store %arg7[%c0_17, %c0_18], %27 {strides = array<i32>} : memref<8x2xf32, #tpu.memory_space<vmem>>, vector<8x2xf32>,
    return
  }
  func.func @transform_0(%arg0: i32) -> (i32, i32) {
    %c0_i32 = arith.constant 0 : i32
    %c0_i32_0 = arith.constant 0 : i32
    return %arg0, %c0_i32 : i32, i32
  }
  func.func @transform_1(%arg0: i32) -> (i32, i32) {
    %c0_i32 = arith.constant 0 : i32
    %c0_i32_0 = arith.constant 0 : i32
    return %arg0, %c0_i32 : i32, i32
  }
  func.func @transform_2(%arg0: i32) -> (i32, i32) {
    %c0_i32 = arith.constant 0 : i32
    %c0_i32_0 = arith.constant 0 : i32
    %c0_i32_1 = arith.constant 0 : i32
    return %c0_i32, %c0_i32_0 : i32, i32
  }
  func.func @transform_3(%arg0: i32) -> (i32, i32) {
    %c0_i32 = arith.constant 0 : i32
    %c0_i32_0 = arith.constant 0 : i32
    %c0_i32_1 = arith.constant 0 : i32
    return %c0_i32, %c0_i32_0 : i32, i32
  }
  func.func @transform_4(%arg0: i32) -> (i32, i32) {
    %c0_i32 = arith.constant 0 : i32
    %c0_i32_0 = arith.constant 0 : i32
    %c0_i32_1 = arith.constant 0 : i32
    return %c0_i32, %c0_i32_0 : i32, i32
  }
  func.func @transform_5(%arg0: i32) -> (i32, i32) {
    %c0_i32 = arith.constant 0 : i32
    %c0_i32_0 = arith.constant 0 : i32
    %c0_i32_1 = arith.constant 0 : i32
    return %c0_i32, %c0_i32_0 : i32, i32
  }
  func.func @transform_6(%arg0: i32) -> (i32, i32) {
    %c0_i32 = arith.constant 0 : i32
    %c0_i32_0 = arith.constant 0 : i32
    return %arg0, %c0_i32 : i32, i32
  }
}

</mosaic_0001>

<bundles_post_ra>
// kernel: tpu_custom_call.1
= control target key start
LH: loop header
LB: loop body
LE: loop exit
PB: predicated region body
PF: predicated region fallthrough
CT: control target
= control target key end

     0   :  { %11 = vsyncpa [#allocation3], 0  ;;  %s613_s0 = inlined_call_operand.hbm [shape: f32[8,16], index: 0, kind: input, shape index: {}]   ;;  %s614_s1 = inlined_call_operand.hbm [shape: f32[8,16], index: 1, kind: input, shape index: {}]   ;;  %s615_s2 = inlined_call_operand.hbm [shape: f32[32,128], index: 2, kind: input, shape index: {}]   ;;  %s616_s3 = inlined_call_operand.vmem [shape: f32[1,128], index: 3, kind: input, shape index: {}]   ;;  %s617_s4 = inlined_call_operand.hbm [shape: f32[128,128], index: 4, kind: input, shape index: {}]   ;;  %s618_s5 = inlined_call_operand.vmem [shape: f32[1,128], index: 5, kind: input, shape index: {}]   ;;  %s619_s6 = inlined_call_operand.vmem [shape: f32[8,2], index: 6, kind: output, shape index: {}]  }
   0x1   :  { %12 = vsyncpa [#allocation5], 0 }
   0x2   :  { %13 = vsyncpa [#allocation8], 0  ;;  %s521_s21 = smov [#allocation4]   ;;  %s522_s23 = smov [#allocation2]  }
   0x3   :  { %s30_s22 = sshll.u32 %s521_s21, 4  ;;  %s20_s24 = sshll.u32 %s522_s23, 4  ;;  %s31_s22 = int_to_ptr.vmem [resolvable:$true] %s30_s22  ;;  %s21_s24 = int_to_ptr.vmem [resolvable:$true] %s20_s24 }
   0x4   :  { %s443_s25 = scalar_lea.vmem %s31_s22, 128  ;;  %p448_p1 = scmp.lt.s32.totalorder %s31_s22, %s31_s22 }
   0x5   :  { %p444_p0 = scmp.ne.s32.totalorder %s31_s22, %s443_s25  ;;  %p449_p2 = scmp.lt.s32.totalorder %s443_s25, %s443_s25 }
   0x7   :  { %p450_p3 = por %p449_p2, %p448_p1 }
   0x9   :  { %p451_p4 = pnand %p450_p3, %p444_p0 }
   0xb   :  { %454 = shalt.err (!%p451_p4)
}
   0xc   :  { %33 = dma.hbm_to_vmem [thread:$0]  %s614_s1, 128, %s31_s22, [#allocation5]  }
   0xd   :  { %s463_s28 = scalar_lea.vmem %s21_s24, 128  ;;  %p468_p6 = scmp.lt.s32.totalorder %s21_s24, %s21_s24 }
   0xe   :  { %p464_p5 = scmp.ne.s32.totalorder %s21_s24, %s463_s28  ;;  %p469_p7 = scmp.lt.s32.totalorder %s463_s28, %s463_s28 }
  0x10   :  { %p470_p8 = por %p469_p7, %p468_p6 }
  0x12   :  { %p471_p9 = pnand %p470_p8, %p464_p5 }
  0x14   :  { %474 = shalt.err (!%p471_p9)
}
  0x15   :  { %23 = dma.hbm_to_vmem [thread:$0]  %s613_s0, 128, %s21_s24, [#allocation3]  }
  0x16   :  { %s523_s7 = smov [#allocation6]  }
  0x17   :  { %s39_s8 = sshll.u32 %s523_s7, 4  ;;  %s40_s8 = int_to_ptr.vmem [resolvable:$true] %s39_s8 }
  0x18   :  { %s483_s9 = scalar_lea.vmem %s40_s8, 512  ;;  %p488_p11 = scmp.lt.s32.totalorder %s40_s8, %s40_s8 }
  0x19   :  { %p484_p10 = scmp.ne.s32.totalorder %s40_s8, %s483_s9  ;;  %p489_p12 = scmp.lt.s32.totalorder %s483_s9, %s483_s9 }
  0x1b   :  { %p490_p13 = por %p489_p12, %p488_p11 }
  0x1d   :  { %p491_p0 = pnand %p490_p13, %p484_p10 }
  0x1f   :  { %494 = shalt.err (!%p491_p0)
}
  0x20   :  { %s524_s1 = smov 128   ;;  %s525_s10 = smov 8  }
  0x21   :  { %45 = dma.hbm_to_vmem [thread:$0]  %s615_s2, 512, %s40_s8, [#allocation5], %s524_s1, %s524_s1, %s525_s10  }
  0x22   :  { %s526_s13 = smov [#allocation7]  }
  0x23   :  { %s53_s14 = sshll.u32 %s526_s13, 4  ;;  %s54_s14 = int_to_ptr.vmem [resolvable:$true] %s53_s14 }
  0x24   :  { %s503_s0 = scalar_lea.vmem %s54_s14, 2048  ;;  %p508_p2 = scmp.lt.s32.totalorder %s54_s14, %s54_s14 }
  0x25   :  { %p504_p1 = scmp.ne.s32.totalorder %s54_s14, %s503_s0  ;;  %p509_p3 = scmp.lt.s32.totalorder %s503_s0, %s503_s0 }
  0x27   :  { %p510_p4 = por %p509_p3, %p508_p2 }
  0x29   :  { %p511_p5 = pnand %p510_p4, %p504_p1 }
  0x2b   :  { %514 = shalt.err (!%p511_p5)
}
  0x2c   :  { %59 = dma.hbm_to_vmem [thread:$0]  %s617_s4, 2048, %s54_s14, [#allocation8], %s524_s1, %s524_s1, %s525_s10  }
  0x2d   :  { %515 = dma.done.wait [#allocation3], 128  }
  0x2e   :  { %516 = vsyncadd [#allocation3], 4294967168 }
  0x2f   :  { %517 = dma.done.wait [#allocation5], 640  }
  0x30   :  { %518 = vsyncadd [#allocation5], 4294966656 }
  0x31   :  { %519 = dma.done.wait [#allocation8], 2048  }
  0x32   :  { %520 = vsyncadd [#allocation8], 4294965248  ;;  %v527_v0 = vmov 0.0   ;;  %vm528_vm0 = vmmov 0   ;;  %v79_v1 = vld [vmem:[#allocation6 + $0x18] sm:$0xff]  ;;  %v78_v2 = vld [vmem:[#allocation6 + $0x10] sm:$0xff] }
  0x33   :  { %374 = vmatprep.subr.mxu1 %v527_v0  ;;  %378 = vmatprep.mubr.msk.f32.mxu1 %vm528_vm0, %v527_v0  ;;  %v77_v3 = vld [vmem:[#allocation4] sm:$0xff]  ;;  %vm80_vm1 = vcmask 130048   ;;  %v76_v4 = vld [vmem:[#allocation6 + $0x8] sm:$0xff]  ;;  %v75_v6 = vld [vmem:[#allocation6] sm:$0xff]  ;;  %vm338_vm2 = vcmask 15360  }
  0x34   :  { %388 = vmatprep.subr.mxu0 %v527_v0  ;;  %420 = vmatprep.mubr.msk.f32.mxu0 %vm528_vm0, %v527_v0  ;;  %v251_v5 = vld [vmem:[#allocation7 + $0x78] sm:$0xff]  ;;  %v250_v7 = vld [vmem:[#allocation7 + $0x70] sm:$0xff]  ;;  %v249_v9 = vld [vmem:[#allocation7 + $0x68] sm:$0xff] }
  0x35   :  { %375 = vmatpush3.msra.mxu1 %v79_v1  ;;  %389 = vmatpush3.msra.mxu0 %v251_v5  ;;  %v74_v8 = vld [vmem:[#allocation2] sm:$0xff]  ;;  %v248_v10 = vld [vmem:[#allocation7 + $0x60] sm:$0xff]  ;;  %v247_v11 = vld [vmem:[#allocation7 + $0x58] sm:$0xff] }
  0x36   :  { %376 = vmatprep.subr.mxu1 %v527_v0  ;;  %390 = vmatprep.subr.mxu0 %v527_v0  ;;  %v246_v12 = vld [vmem:[#allocation7 + $0x50] sm:$0xff]  ;;  %v245_v13 = vld [vmem:[#allocation7 + $0x48] sm:$0xff]  ;;  %v244_v14 = vld [vmem:[#allocation7 + $0x40] sm:$0xff] }
  0x37   :  { %377 = vmatpush3.msra.mxu1 %v78_v2  ;;  %391 = vmatpush3.msra.mxu0 %v250_v7  ;;  %v243_v15 = vld [vmem:[#allocation7 + $0x38] sm:$0xff]  ;;  %v242_v16 = vld [vmem:[#allocation7 + $0x30] sm:$0xff]  ;;  %v241_v17 = vld [vmem:[#allocation7 + $0x28] sm:$0xff] }
  0x38   :  { %379 = vmatmul.mubr.msk.f32.vlgmr.msra.gmra.mxu1 %vm80_vm1, %v77_v3  ;;  %381 = vmatprep.subr.mxu1 %v527_v0  ;;  %v240_v18 = vld [vmem:[#allocation7 + $0x20] sm:$0xff]  ;;  %v239_v19 = vld [vmem:[#allocation7 + $0x18] sm:$0xff]  ;;  %v238_v20 = vld [vmem:[#allocation7 + $0x10] sm:$0xff] }
  0x39   :  { %382 = vmatpush3.msra.mxu1 %v76_v4  ;;  %385 = vmatprep.mubr.msk.f32.mxu1 %vm528_vm0, %v527_v0  ;;  %v237_v21 = vld [vmem:[#allocation7 + $0x8] sm:$0xff]  ;;  %v236_v22 = vld [vmem:[#allocation7] sm:$0xff]  ;;  %v349_v26 = vld [vmem:[%s616_s3] ss:$0 sm:$0xff] }
  0x3a   :  { %383 = vmatprep.subr.mxu1 %v527_v0  ;;  %392 = vmatprep.subr.mxu0 %v527_v0  ;;  %v350_v31 = vld [vmem:[%s618_s5] ss:$0 sm:$0xff] }
  0x3b   :  { %384 = vmatpush3.msra.mxu1 %v75_v6  ;;  %393 = vmatpush3.msra.mxu0 %v249_v9 }
  0x3c   :  { %386 = vmatmul.mubr.msk.f32.vlgmr.msra.gmra.mxu1 %vm80_vm1, %v74_v8  ;;  %394 = vmatprep.subr.mxu0 %v527_v0 }
  0x3d   :  { %395 = vmatpush3.msra.mxu0 %v248_v10 }
  0x3e   :  { %396 = vmatprep.subr.mxu0 %v527_v0 }
  0x3f   :  { %397 = vmatpush3.msra.mxu0 %v247_v11 }
  0x40   :  { %398 = vmatprep.subr.mxu0 %v527_v0 }
  0x41   :  { %399 = vmatpush3.msra.mxu0 %v246_v12 }
  0x42   :  { %400 = vmatprep.subr.mxu0 %v527_v0 }
  0x43   :  { %401 = vmatpush3.msra.mxu0 %v245_v13 }
  0x44   :  { %402 = vmatprep.subr.mxu0 %v527_v0 }
  0x45   :  { %403 = vmatpush3.msra.mxu0 %v244_v14 }
  0x46   :  { %404 = vmatprep.subr.mxu0 %v527_v0 }
  0x47   :  { %405 = vmatpush3.msra.mxu0 %v243_v15 }
  0x48   :  { %406 = vmatprep.subr.mxu0 %v527_v0 }
  0x49   :  { %407 = vmatpush3.msra.mxu0 %v242_v16 }
  0x4a   :  { %408 = vmatprep.subr.mxu0 %v527_v0 }
  0x4b   :  { %409 = vmatpush3.msra.mxu0 %v241_v17 }
  0x4c   :  { %410 = vmatprep.subr.mxu0 %v527_v0 }
  0x4d   :  { %411 = vmatpush3.msra.mxu0 %v240_v18 }
  0x4e   :  { %412 = vmatprep.subr.mxu0 %v527_v0 }
  0x4f   :  { %413 = vmatpush3.msra.mxu0 %v239_v19 }
  0x50   :  { %414 = vmatprep.subr.mxu0 %v527_v0 }
  0x51   :  { %415 = vmatpush3.msra.mxu0 %v238_v20 }
  0x52   :  { %416 = vmatprep.subr.mxu0 %v527_v0 }
  0x53   :  { %417 = vmatpush3.msra.mxu0 %v237_v21 }
  0x54   :  { %418 = vmatprep.subr.mxu0 %v527_v0 }
  0x55   :  { %419 = vmatpush3.msra.mxu0 %v236_v22 }
  0xf8   :  { %v150_v23 = vpop.f32.mrf.mxu1 }
  0xfa   :  { %v380_v24 = vpop.f32.mrf.mxu1 }
  0xfc   :  { %v223_v25 = vpop.f32.mrf.mxu1 }
  0xfd   :  { %v224_v27 = vadd.f32 %v223_v25, %v150_v23 }
  0xfe   :  { %v387_v28 = vpop.f32.mrf.mxu1 }
  0xff   :  { %v234_v29 = vadd.f32 %v349_v26, %v224_v27 }
 0x101   :  { %v235_v30 = vmax.f32 %v234_v29, 0.0 }
 0x103   :  { %421 = vmatmul.mubr.f32.vlgmr.msra.gmra.mxu0 %v235_v30 }
 0x1c3   :  { %v325_v32 = vpop.f32.mrf.mxu0 }
 0x1c4   :  { %v326_v33 = vadd.f32 %v350_v31, %v325_v32 }
 0x1c5   :  { %v422_v34 = vpop.f32.mrf.mxu0 }
 0x1c6   :  { %329 = vmax.xlane.f32.xlu0 %v326_v33 }
 0x24f   :  { %v330_v35 = vpop.xlane.xlu0 %329 }
 0x250   :  { %v331_v36 = vsub.f32 %v326_v33, %v330_v35 }
 0x252   :  { %v332_v37 = vmul.f32 1.442695, %v331_v36 }
 0x254   :  { %431 = vpow2.f32 %v332_v37 }
 0x261   :  { %v432_v38 = vpop.eup %431 }
 0x262   :  { %334 = vadd.xlane.f32.xlu0 %v432_v38 }
 0x2eb   :  { %v335_v39 = vpop.xlane.xlu0 %334 }
 0x2ec   :  { %433 = vrcp.f32 %v335_v39 }
 0x2f9   :  { %v434_v40 = vpop.eup %433 }
 0x2fa   :  { %v337_v41 = vmul.f32 %v434_v40, %v432_v38 }
 0x2fc   :  { %339 = vst.msk [vmem:[%s619_s6] sm:$0xff] %vm338_vm2, %v337_v41 }
 0x2fd   :  { %344 = vsyncpa [#allocation3], 1 }
 0x2fe   :  { %345 = vsyncpa [#allocation5], 1 }
 0x2ff   :  { %346 = vsyncpa [#allocation8], 1 }

</bundles_post_ra>
